<compile_context>
chip_gen: v6e
topology: v6e:2x2x1
jax: 0.10.0
libtpu: 0.0.40
codegen_flags: <defaults>
</compile_context>

<pallas_src>
import functools

import jax
import jax.numpy as jnp
from jax.experimental import pallas as pl
from jax.experimental.pallas import tpu as pltpu


def _kl_loss_kernel(c_ref, ap_ref, agt_ref, xdes_ref, xt_ref, out_ref,
                    mse_acc_ref, kl_acc_ref, *,
                    batch, tile_b, inv_n_mse, inv_batch, needs_mask):
    step = pl.program_id(0)
    last = pl.num_programs(0) - 1

    @pl.when(step == 0)
    def _init():
        mse_acc_ref[...] = jnp.zeros_like(mse_acc_ref)
        kl_acc_ref[...] = jnp.zeros_like(kl_acc_ref)

    # Mask rows of a ragged final tile (the block may extend past the array; the
    # padded region of the VMEM buffer holds garbage that must not reach exp/sum).
    if needs_mask:
        row_ids = jax.lax.broadcasted_iota(jnp.int32, (tile_b, 1), 0) + step * tile_b
        row_mask = row_ids < batch
        mask = lambda v: jnp.where(row_mask, v, 0.0)
    else:
        mask = lambda v: v

    # ---- MSELoss partial sum (mean scaling applied at finalize) -----------------
    ap = ap_ref[...].astype(jnp.float32)
    agt = agt_ref[...].astype(jnp.float32)
    diff = mask(ap - agt)                                               # (TB, A)
    mse_part = jnp.sum(jnp.sum(diff * diff, axis=1, keepdims=True),
                       axis=0, keepdims=True)                           # (1, 1)

    # ---- KLDiv(batchmean)(log_softmax(x_des,1), softmax(x_t,1)) partial sum -----
    x_des = mask(xdes_ref[...].astype(jnp.float32))                     # (TB, D)
    x_t = mask(xt_ref[...].astype(jnp.float32))                         # (TB, D)

    z_des = x_des - jnp.max(x_des, axis=1, keepdims=True)
    lse_des = jnp.log(jnp.sum(jnp.exp(z_des), axis=1, keepdims=True))   # (TB, 1)

    z_t = x_t - jnp.max(x_t, axis=1, keepdims=True)
    e_t = jnp.exp(z_t)
    denom_t = jnp.sum(e_t, axis=1, keepdims=True)                       # (TB, 1)

    # KL_row = (sum_j e_t*(z_t - z_des)) / denom_t - log(denom_t) + lse_des
    num = jnp.sum(e_t * (z_t - z_des), axis=1, keepdims=True)           # (TB, 1)
    inv_denom = pl.reciprocal(denom_t, approx=True)                     # EUP slot
    inv_denom = inv_denom * (2.0 - denom_t * inv_denom)                 # 1 NR step -> full f32
    kl_row = mask(num * inv_denom - jnp.log(denom_t) + lse_des)         # (TB, 1)
    kl_part = jnp.sum(kl_row, axis=0, keepdims=True)                    # (1, 1)

    mse_acc_ref[...] += jnp.broadcast_to(mse_part, mse_acc_ref.shape)
    kl_acc_ref[...] += jnp.broadcast_to(kl_part, kl_acc_ref.shape)

    @pl.when(step == last)
    def _finalize():
        c = c_ref[0]
        torq = mse_acc_ref[...] * inv_n_mse            # (1,128)  MSE mean
        kl = kl_acc_ref[...] * inv_batch               # (1,128)  batchmean KL
        total = torq + c * kl
        out_ref[...] = jnp.concatenate([total, torq], axis=0).astype(out_ref.dtype)


def kl_loss_pallas(action_predicted, action_ground_truth, x_des, x_t, C,
                   *, max_tile_b=1024):
    """Returns (torques_loss + C * latent_kl_loss, torques_loss) as f32 scalars."""
    assert action_predicted.shape == action_ground_truth.shape
    assert x_des.shape == x_t.shape
    assert action_predicted.shape[0] == x_des.shape[0]
    B, A = action_predicted.shape
    D = x_des.shape[1]

    tile_b = B if B <= max_tile_b else max_tile_b
    num_tiles = pl.cdiv(B, tile_b)
    needs_mask = (num_tiles * tile_b) != B

    kernel = functools.partial(
        _kl_loss_kernel,
        batch=B,
        tile_b=tile_b,
        inv_n_mse=1.0 / float(B * A),
        inv_batch=1.0 / float(B),
        needs_mask=needs_mask,
    )

    # C as an SMEM scalar (works for python floats and traced values alike).
    c_arr = jnp.asarray(C, dtype=jnp.float32).reshape((1,))

    out = pl.pallas_call(
        kernel,
        out_shape=jax.ShapeDtypeStruct((2, 128), jnp.float32),
        grid_spec=pltpu.PrefetchScalarGridSpec(
            num_scalar_prefetch=0,
            grid=(num_tiles,),
            in_specs=[
                pl.BlockSpec(memory_space=pltpu.MemorySpace.SMEM),      # C (1,)
                pl.BlockSpec((tile_b, A), lambda i: (i, 0)),
                pl.BlockSpec((tile_b, A), lambda i: (i, 0)),
                pl.BlockSpec((tile_b, D), lambda i: (i, 0)),
                pl.BlockSpec((tile_b, D), lambda i: (i, 0)),
            ],
            out_specs=pl.BlockSpec((2, 128), lambda i: (0, 0)),
            scratch_shapes=[pltpu.VMEM((1, 128), jnp.float32),
                            pltpu.VMEM((1, 128), jnp.float32)],
        ),
        compiler_params=pltpu.CompilerParams(
            dimension_semantics=("arbitrary",)),
    )(c_arr, action_predicted, action_ground_truth, x_des, x_t)

    # TODO(synk): on v7x, add a leading size-2 "parallel" grid axis splitting the batch
    # across the 2 TensorCores (per-core partial-sum rows, summed host-side) for ~2x on
    # the compute-bound portion.
    # TODO(synk): if the producer can lay x_des/x_t out with a 128-multiple last dim
    # (fold batch into lanes), EUP/VPU lane utilization improves ~4x for D=32.
    return out[0, 0], out[1, 0]


# ----------------------------------------------------------------------------
# Pure-JAX reference (mirrors the PyTorch forward exactly) for validation.
# ----------------------------------------------------------------------------
def kl_loss_ref(action_predicted, action_ground_truth, x_des, x_t, C):
    torques_loss = jnp.mean((action_predicted - action_ground_truth) ** 2)
    x_des_log = jax.nn.log_softmax(x_des, axis=1)
    x_t_dist = jax.nn.softmax(x_t, axis=1)
    latent_kl = jnp.sum(x_t_dist * (jnp.log(x_t_dist) - x_des_log)) / x_des.shape[0]
    return torques_loss + C * latent_kl, torques_loss


if __name__ == "__main__":
    batch, action_dim, latent_dim = 2, 8, 32
    C = 0.5

    key = jax.random.PRNGKey(0)
    k1, k2, k3, k4 = jax.random.split(key, 4)
    action_pred = jax.random.normal(k1, (batch, action_dim), jnp.float32)
    action_gt = jax.random.normal(k2, (batch, action_dim), jnp.float32)
    x_des = jax.random.normal(k3, (batch, latent_dim), jnp.float32)
    x_t = jax.random.normal(k4, (batch, latent_dim), jnp.float32)

    total, torq = kl_loss_pallas(action_pred, action_gt, x_des, x_t, C)
    total = jax.block_until_ready(total)
    torq = jax.block_until_ready(torq)

    ref_total, ref_torq = kl_loss_ref(action_pred, action_gt, x_des, x_t, C)
    assert jnp.allclose(torq, ref_torq, atol=1e-5, rtol=1e-5), (torq, ref_torq)
    assert jnp.allclose(total, ref_total, atol=1e-5, rtol=1e-5), (total, ref_total)

    print("KERNEL_OK")
</pallas_src>

<mosaic_0001>
module attributes {stable_mosaic.version = 11 : i64} {
  func.func @_kl_loss_kernel(%arg0: i32, %arg1: memref<1xf32, #tpu.memory_space<smem>>, %arg2: memref<2x8xf32, #tpu.memory_space<vmem>>, %arg3: memref<2x8xf32, #tpu.memory_space<vmem>>, %arg4: memref<2x32xf32, #tpu.memory_space<vmem>>, %arg5: memref<2x32xf32, #tpu.memory_space<vmem>>, %arg6: memref<2x128xf32, #tpu.memory_space<vmem>>, %arg7: memref<1x128xf32, #tpu.memory_space<vmem>>, %arg8: memref<1x128xf32, #tpu.memory_space<vmem>>) attributes {dimension_semantics = [#tpu.dimension_semantics<arbitrary>], iteration_bounds = array<i64: 1>, scalar_prefetch = 0 : i64, scratch_operands = 2 : i64, tpu.core_type = #tpu.core_type<tc>, window_params = [{transform_indices = @transform_0, window_bounds = array<i64: 1>}, {transform_indices = @transform_1, window_bounds = array<i64: 2, 8>}, {transform_indices = @transform_2, window_bounds = array<i64: 2, 8>}, {transform_indices = @transform_3, window_bounds = array<i64: 2, 32>}, {transform_indices = @transform_4, window_bounds = array<i64: 2, 32>}, {pipeline_mode = #tpu.pipeline_mode<synchronous>, transform_indices = @transform_5, window_bounds = array<i64: 2, 128>}]} {
    %c0_i32 = arith.constant 0 : i32
    %0 = arith.cmpi eq, %arg0, %c0_i32 : i32
    %1 = arith.extui %0 : i1 to i32
    %c0_i32_0 = arith.constant 0 : i32
    %2 = arith.cmpi ne, %1, %c0_i32_0 : i32
    scf.if %2 {
      %cst_26 = arith.constant 0.000000e+00 : f32
      %56 = vector.broadcast %cst_26 : f32 to vector<1x128xf32>
      %c0_27 = arith.constant 0 : index
      %c0_28 = arith.constant 0 : index
      %57 = vector.load %arg7[%c0_27, %c0_28] : memref<1x128xf32, #tpu.memory_space<vmem>>, vector<1x128xf32>
      tpu.vector_store %arg7[%c0_27, %c0_28], %56 {strides = array<i32>} : memref<1x128xf32, #tpu.memory_space<vmem>>, vector<1x128xf32>,
      %cst_29 = arith.constant 0.000000e+00 : f32
      %58 = vector.broadcast %cst_29 : f32 to vector<1x128xf32>
      %c0_30 = arith.constant 0 : index
      %c0_31 = arith.constant 0 : index
      %59 = vector.load %arg8[%c0_30, %c0_31] : memref<1x128xf32, #tpu.memory_space<vmem>>, vector<1x128xf32>
      tpu.vector_store %arg8[%c0_30, %c0_31], %58 {strides = array<i32>} : memref<1x128xf32, #tpu.memory_space<vmem>>, vector<1x128xf32>,
    } else {
    }
    %c0 = arith.constant 0 : index
    %c0_1 = arith.constant 0 : index
    %3 = vector.load %arg2[%c0, %c0_1] : memref<2x8xf32, #tpu.memory_space<vmem>>, vector<2x8xf32>
    %c0_2 = arith.constant 0 : index
    %c0_3 = arith.constant 0 : index
    %4 = vector.load %arg3[%c0_2, %c0_3] : memref<2x8xf32, #tpu.memory_space<vmem>>, vector<2x8xf32>
    %5 = arith.subf %3, %4 : vector<2x8xf32>
    %6 = arith.mulf %5, %5 : vector<2x8xf32>
    %cst = arith.constant dense<0.000000e+00> : vector<2xf32>
    %7 = vector.multi_reduction <add>, %6, %cst [1] : vector<2x8xf32> to vector<2xf32>
    %8 = vector.shape_cast %7 : vector<2xf32> to vector<2x1xf32>
    %cst_4 = arith.constant dense<0.000000e+00> : vector<1xf32>
    %9 = vector.multi_reduction <add>, %8, %cst_4 [0] : vector<2x1xf32> to vector<1xf32>
    %10 = vector.shape_cast %9 : vector<1xf32> to vector<1x1xf32>
    %c0_5 = arith.constant 0 : index
    %c0_6 = arith.constant 0 : index
    %11 = vector.load %arg4[%c0_5, %c0_6] : memref<2x32xf32, #tpu.memory_space<vmem>>, vector<2x32xf32>
    %c0_7 = arith.constant 0 : index
    %c0_8 = arith.constant 0 : index
    %12 = vector.load %arg5[%c0_7, %c0_8] : memref<2x32xf32, #tpu.memory_space<vmem>>, vector<2x32xf32>
    %cst_9 = arith.constant dense<0xFF800000> : vector<2xf32>
    %13 = vector.multi_reduction <maximumf>, %11, %cst_9 [1] : vector<2x32xf32> to vector<2xf32>
    %14 = vector.shape_cast %13 : vector<2xf32> to vector<2x1xf32>
    %15 = vector.broadcast %14 : vector<2x1xf32> to vector<2x32xf32>
    %16 = arith.subf %11, %15 : vector<2x32xf32>
    %17 = math.exp %16 : vector<2x32xf32>
    %cst_10 = arith.constant dense<0.000000e+00> : vector<2xf32>
    %18 = vector.multi_reduction <add>, %17, %cst_10 [1] : vector<2x32xf32> to vector<2xf32>
    %19 = vector.shape_cast %18 : vector<2xf32> to vector<2x1xf32>
    %20 = math.log %19 : vector<2x1xf32>
    %cst_11 = arith.constant dense<0xFF800000> : vector<2xf32>
    %21 = vector.multi_reduction <maximumf>, %12, %cst_11 [1] : vector<2x32xf32> to vector<2xf32>
    %22 = vector.shape_cast %21 : vector<2xf32> to vector<2x1xf32>
    %23 = vector.broadcast %22 : vector<2x1xf32> to vector<2x32xf32>
    %24 = arith.subf %12, %23 : vector<2x32xf32>
    %25 = math.exp %24 : vector<2x32xf32>
    %cst_12 = arith.constant dense<0.000000e+00> : vector<2xf32>
    %26 = vector.multi_reduction <add>, %25, %cst_12 [1] : vector<2x32xf32> to vector<2xf32>
    %27 = vector.shape_cast %26 : vector<2xf32> to vector<2x1xf32>
    %28 = arith.subf %24, %16 : vector<2x32xf32>
    %29 = arith.mulf %25, %28 : vector<2x32xf32>
    %cst_13 = arith.constant dense<0.000000e+00> : vector<2xf32>
    %30 = vector.multi_reduction <add>, %29, %cst_13 [1] : vector<2x32xf32> to vector<2xf32>
    %31 = vector.shape_cast %30 : vector<2xf32> to vector<2x1xf32>
    %32 = tpu.reciprocal %27 {approx = true} : vector<2x1xf32> -> vector<2x1xf32>
    %33 = arith.mulf %27, %32 : vector<2x1xf32>
    %cst_14 = arith.constant 2.000000e+00 : f32
    %34 = vector.broadcast %cst_14 : f32 to vector<2x1xf32>
    %35 = arith.subf %34, %33 : vector<2x1xf32>
    %36 = arith.mulf %32, %35 : vector<2x1xf32>
    %37 = arith.mulf %31, %36 : vector<2x1xf32>
    %38 = math.log %27 : vector<2x1xf32>
    %39 = arith.subf %37, %38 : vector<2x1xf32>
    %40 = arith.addf %39, %20 : vector<2x1xf32>
    %cst_15 = arith.constant dense<0.000000e+00> : vector<1xf32>
    %41 = vector.multi_reduction <add>, %40, %cst_15 [0] : vector<2x1xf32> to vector<1xf32>
    %42 = vector.shape_cast %41 : vector<1xf32> to vector<1x1xf32>
    %c0_16 = arith.constant 0 : index
    %c0_17 = arith.constant 0 : index
    %43 = vector.load %arg7[%c0_16, %c0_17] : memref<1x128xf32, #tpu.memory_space<vmem>>, vector<1x128xf32>
    %44 = vector.shape_cast %10 : vector<1x1xf32> to vector<1x1xf32>
    %45 = vector.broadcast %44 : vector<1x1xf32> to vector<1x128xf32>
    %46 = arith.addf %43, %45 : vector<1x128xf32>
    %c0_18 = arith.constant 0 : index
    %c0_19 = arith.constant 0 : index
    %47 = vector.load %arg7[%c0_18, %c0_19] : memref<1x128xf32, #tpu.memory_space<vmem>>, vector<1x128xf32>
    tpu.vector_store %arg7[%c0_18, %c0_19], %46 {strides = array<i32>} : memref<1x128xf32, #tpu.memory_space<vmem>>, vector<1x128xf32>,
    %c0_20 = arith.constant 0 : index
    %c0_21 = arith.constant 0 : index
    %48 = vector.load %arg8[%c0_20, %c0_21] : memref<1x128xf32, #tpu.memory_space<vmem>>, vector<1x128xf32>
    %49 = vector.shape_cast %42 : vector<1x1xf32> to vector<1x1xf32>
    %50 = vector.broadcast %49 : vector<1x1xf32> to vector<1x128xf32>
    %51 = arith.addf %48, %50 : vector<1x128xf32>
    %c0_22 = arith.constant 0 : index
    %c0_23 = arith.constant 0 : index
    %52 = vector.load %arg8[%c0_22, %c0_23] : memref<1x128xf32, #tpu.memory_space<vmem>>, vector<1x128xf32>
    tpu.vector_store %arg8[%c0_22, %c0_23], %51 {strides = array<i32>} : memref<1x128xf32, #tpu.memory_space<vmem>>, vector<1x128xf32>,
    %c0_i32_24 = arith.constant 0 : i32
    %53 = arith.cmpi eq, %arg0, %c0_i32_24 : i32
    %54 = arith.extui %53 : i1 to i32
    %c0_i32_25 = arith.constant 0 : i32
    %55 = arith.cmpi ne, %54, %c0_i32_25 : i32
    scf.if %55 {
      %c0_26 = arith.constant 0 : index
      %56 = memref.load %arg1[%c0_26] : memref<1xf32, #tpu.memory_space<smem>>
      %c0_27 = arith.constant 0 : index
      %c0_28 = arith.constant 0 : index
      %57 = vector.load %arg7[%c0_27, %c0_28] : memref<1x128xf32, #tpu.memory_space<vmem>>, vector<1x128xf32>
      %cst_29 = arith.constant 6.250000e-02 : f32
      %58 = vector.broadcast %cst_29 : f32 to vector<1x128xf32>
      %59 = arith.mulf %57, %58 : vector<1x128xf32>
      %c0_30 = arith.constant 0 : index
      %c0_31 = arith.constant 0 : index
      %60 = vector.load %arg8[%c0_30, %c0_31] : memref<1x128xf32, #tpu.memory_space<vmem>>, vector<1x128xf32>
      %cst_32 = arith.constant 5.000000e-01 : f32
      %61 = vector.broadcast %cst_32 : f32 to vector<1x128xf32>
      %62 = arith.mulf %60, %61 : vector<1x128xf32>
      %63 = vector.broadcast %56 : f32 to vector<1x128xf32>
      %64 = arith.mulf %63, %62 : vector<1x128xf32>
      %65 = arith.addf %59, %64 : vector<1x128xf32>
      %66 = tpu.concatenate %65, %59 in 0 : vector<1x128xf32>, vector<1x128xf32> -> vector<2x128xf32>
      %c0_33 = arith.constant 0 : index
      %c0_34 = arith.constant 0 : index
      %67 = vector.load %arg6[%c0_33, %c0_34] : memref<2x128xf32, #tpu.memory_space<vmem>>, vector<2x128xf32>
      tpu.vector_store %arg6[%c0_33, %c0_34], %66 {strides = array<i32>} : memref<2x128xf32, #tpu.memory_space<vmem>>, vector<2x128xf32>,
    } else {
    }
    return
  }
  func.func @transform_0(%arg0: i32) -> i32 {
    %c0_i32 = arith.constant 0 : i32
    %c0_i32_0 = arith.constant 0 : i32
    return %c0_i32 : i32
  }
  func.func @transform_1(%arg0: i32) -> (i32, i32) {
    %c0_i32 = arith.constant 0 : i32
    %c0_i32_0 = arith.constant 0 : i32
    return %arg0, %c0_i32 : i32, i32
  }
  func.func @transform_2(%arg0: i32) -> (i32, i32) {
    %c0_i32 = arith.constant 0 : i32
    %c0_i32_0 = arith.constant 0 : i32
    return %arg0, %c0_i32 : i32, i32
  }
  func.func @transform_3(%arg0: i32) -> (i32, i32) {
    %c0_i32 = arith.constant 0 : i32
    %c0_i32_0 = arith.constant 0 : i32
    return %arg0, %c0_i32 : i32, i32
  }
  func.func @transform_4(%arg0: i32) -> (i32, i32) {
    %c0_i32 = arith.constant 0 : i32
    %c0_i32_0 = arith.constant 0 : i32
    return %arg0, %c0_i32 : i32, i32
  }
  func.func @transform_5(%arg0: i32) -> (i32, i32) {
    %c0_i32 = arith.constant 0 : i32
    %c0_i32_0 = arith.constant 0 : i32
    %c0_i32_1 = arith.constant 0 : i32
    return %c0_i32, %c0_i32_0 : i32, i32
  }
}

</mosaic_0001>

<bundles_post_ra>
// kernel: tpu_custom_call.1
= control target key start
LH: loop header
LB: loop body
LE: loop exit
PB: predicated region body
PF: predicated region fallthrough
CT: control target
= control target key end

     0   :  { %11 = vsyncpa [#allocation6], 0  ;;  %s256_s0 = inlined_call_operand.<no memory space> [shape: f32[1], index: 0, kind: input, shape index: {}]   ;;  %s257_s1 = inlined_call_operand.vmem [shape: f32[2,8], index: 1, kind: input, shape index: {}]   ;;  %s258_s2 = inlined_call_operand.hbm [shape: f32[2,8], index: 2, kind: input, shape index: {}]   ;;  %s259_s3 = inlined_call_operand.vmem [shape: f32[2,32], index: 3, kind: input, shape index: {}]   ;;  %s260_s4 = inlined_call_operand.vmem [shape: f32[2,32], index: 4, kind: input, shape index: {}]   ;;  %s261_s5 = inlined_call_operand.hbm [shape: f32[2,128], index: 5, kind: output, shape index: {}]  }
   0x1   :  { %12 = vsyncpa [#allocation7], 0  ;;  %s198_s18 = smov [#allocation5]  }
   0x2   :  { %s23_s19 = sshll.u32 %s198_s18, 4  ;;  %s24_s19 = int_to_ptr.vmem [resolvable:$true] %s23_s19 }
   0x3   :  { %s162_s20 = scalar_lea.vmem %s24_s19, 32  ;;  %p167_p1 = scmp.lt.s32.totalorder %s24_s19, %s24_s19 }
   0x4   :  { %p163_p0 = scmp.ne.s32.totalorder %s24_s19, %s162_s20  ;;  %p168_p2 = scmp.lt.s32.totalorder %s162_s20, %s162_s20 }
   0x6   :  { %p169_p3 = por %p168_p2, %p167_p1 }
   0x8   :  { %p170_p4 = pnand %p169_p3, %p163_p0 }
   0xa   :  { %173 = shalt.err (!%p170_p4)
}
   0xb   :  { %26 = dma.hbm_to_vmem [thread:$0]  %s258_s2, 32, %s24_s19, [#allocation6]  }
   0xc   :  { %194 = dma.done.wait [#allocation6], 32  }
   0xd   :  { %195 = vsyncadd [#allocation6], 4294967264  ;;  %vm58_vm0 = vcmask 254976   ;;  %v57_v0 = vld [vmem:[%s260_s4] sm:$0x3]  ;;  %vm44_vm1 = vcmask 58368   ;;  %v118_v56 = vlaneseq  ;;  %v114_v60 = vstv %s256_s0 }
   0xe   :  { %v56_v1 = vld [vmem:[%s259_s3] sm:$0x3]  ;;  %v70_v2 = vsel %vm58_vm0, %v57_v0, -inf  ;;  %v41_v11 = vld [vmem:[#allocation5] sm:$0x3]  ;;  %v199_v22 = vmov 0.0  }
   0xf   :  { %71 = vmax.xlane.f32.xlu0 %v70_v2  ;;  %v59_v3 = vsel %vm58_vm0, %v56_v1, -inf  ;;  %v40_v10 = vld [vmem:[%s257_s1] sm:$0x3]  ;;  %38 = vst [vmem:[#allocation2] sm:$0x1] %v199_v22  ;;  %vm48_vm2 = vcmask 1041408  }
  0x10   :  { %v42_v13 = vsub.f32 %v40_v10, %v41_v11  ;;  %39 = vst [vmem:[#allocation3] sm:$0x1] %v199_v22  ;;  %v119_v57 = vshrl.u32 %v118_v56, 7  ;;  %s200_s27 = smov [#allocation8]   ;;  %vm123_vm3 = vcmask 1040384  }
  0x11   :  { %s132_s28 = sshll.u32 %s200_s27, 4  ;;  %s133_s28 = int_to_ptr.vmem [resolvable:$true] %s132_s28 }
  0x12   :  { %v43_v18 = vmul.f32 %v42_v13, %v42_v13  ;;  %v120_v63 = vsub.s32 0, %v119_v57  ;;  %s174_s29 = scalar_lea.vmem %s133_s28, 32  ;;  %p179_p6 = scmp.lt.s32.totalorder %s133_s28, %s133_s28 }
  0x13   :  { %60 = vmax.xlane.f32.xlu0 %v59_v3  ;;  %p175_p5 = scmp.ne.s32.totalorder %s133_s28, %s174_s29  ;;  %p180_p7 = scmp.lt.s32.totalorder %s174_s29, %s174_s29 }
  0x14   :  { %v45_v21 = vsel %vm44_vm1, %v43_v18, 0.0 }
  0x15   :  { %p181_p8 = por %p180_p7, %p179_p6 }
  0x16   :  { %v100_v38 = vld [vmem:[#allocation2] sm:$0x1] }
  0x17   :  { %v103_v53 = vld [vmem:[#allocation3] sm:$0x1]  ;;  %p182_p9 = pnand %p181_p8, %p175_p5 }
  0x98   :  { %v72_v4 = vpop.xlane.xlu0 %71 }
  0x99   :  { %v73_v5 = vsub.f32 %v57_v0, %v72_v4 }
  0x9b   :  { %v74_v6 = vmul.f32 1.442695, %v73_v5 }
  0x9c   :  { %v61_v7 = vpop.xlane.xlu0 %60 }
  0x9d   :  { %144 = vpow2.f32 %v74_v6  ;;  %v62_v8 = vsub.f32 %v56_v1, %v61_v7 }
  0x9f   :  { %v63_v9 = vmul.f32 1.442695, %v62_v8  ;;  %v79_v12 = vsub.f32 %v73_v5, %v62_v8 }
  0xa1   :  { %146 = vpow2.f32 %v63_v9 }
  0xaa   :  { %v145_v14 = vpop.eup %144 }
  0xab   :  { %v76_v15 = vsel %vm58_vm0, %v145_v14, 0.0  ;;  %v80_v16 = vmul.f32 %v145_v14, %v79_v12 }
  0xac   :  { %77 = vadd.xlane.f32.xlu1 %v76_v15 }
  0xad   :  { %v81_v17 = vsel %vm58_vm0, %v80_v16, 0.0 }
  0xae   :  { %v147_v19 = vpop.eup %146  ;;  %82 = vadd.xlane.f32.xlu0 %v81_v17 }
  0xaf   :  { %v65_v20 = vsel %vm58_vm0, %v147_v19, 0.0 }
  0xb0   :  { %66 = vadd.xlane.f32.xlu1 %v65_v20 }
  0xb4   :  { %46 = vadd.xlane.f32.xlu1 %v45_v21 }
 0x135   :  { %v78_v23 = vpop.xlane.xlu1 %77 }
 0x136   :  { %148 = vrcp.f32 %v78_v23 }
 0x137   :  { %150 = vlog2.f32 %v78_v23  ;;  %v83_v39 = vpop.xlane.xlu0 %82 }
 0x139   :  { %v67_v24 = vpop.xlane.xlu1 %66 }
 0x13a   :  { %152 = vlog2.f32 %v67_v24 }
 0x13d   :  { %v47_v25 = vpop.xlane.xlu1 %46 }
 0x13e   :  { %v49_v26 = vsel %vm48_vm2, %v47_v25, 0.0 }
 0x13f   :  { %v50_v27 = vrot.slane %v49_v26, 4 }
 0x141   :  { %v51_v28 = vadd.f32 %v50_v27, %v49_v26 }
 0x143   :  { %v149_v29 = vpop.eup %148  ;;  %v52_v30 = vrot.slane %v51_v28, 2 }
 0x144   :  { %v85_v31 = vmul.f32 %v149_v29, %v78_v23  ;;  %v151_v33 = vpop.eup %150 }
 0x145   :  { %v53_v32 = vadd.f32 %v52_v30, %v51_v28  ;;  %v90_v41 = vmul.f32 0.6931472, %v151_v33 }
 0x146   :  { %v86_v34 = vsub.f32 2.0, %v85_v31 }
 0x147   :  { %v153_v35 = vpop.eup %152  ;;  %v54_v36 = vrot.slane %v53_v32, 1 }
 0x148   :  { %v87_v37 = vmul.f32 %v149_v29, %v86_v34  ;;  %v69_v43 = vmul.f32 0.6931472, %v153_v35 }
 0x149   :  { %v55_v40 = vadd.f32 %v54_v36, %v53_v32 }
 0x14a   :  { %v88_v42 = vmul.f32 %v87_v37, %v83_v39 }
 0x14b   :  { %v101_v44 = vadd.f32 %v100_v38, %v55_v40 }
 0x14c   :  { %v91_v45 = vsub.f32 %v88_v42, %v90_v41 }
 0x14d   :  { %102 = vst [vmem:[#allocation2] sm:$0x1] %v101_v44 }
 0x14e   :  { %v92_v46 = vadd.f32 %v91_v45, %v69_v43 }
 0x150   :  { %v93_v47 = vsel %vm48_vm2, %v92_v46, 0.0 }
 0x151   :  { %v94_v48 = vrot.slane %v93_v47, 4 }
 0x153   :  { %v95_v49 = vadd.f32 %v94_v48, %v93_v47 }
 0x154   :  { %v110_v58 = vld [vmem:[#allocation2] sm:$0x1] }
 0x155   :  { %v96_v50 = vrot.slane %v95_v49, 2  ;;  %v111_v61 = vmul.f32 0.0625, %v110_v58 }
 0x157   :  { %v97_v51 = vadd.f32 %v96_v50, %v95_v49  ;;  %v121_v2 = vrot.slane %v111_v61, %v120_v63 }
 0x159   :  { %v98_v52 = vrot.slane %v97_v51, 1 }
 0x15b   :  { %v99_v54 = vadd.f32 %v98_v52, %v97_v51 }
 0x15d   :  { %v104_v55 = vadd.f32 %v103_v53, %v99_v54 }
 0x15f   :  { %105 = vst [vmem:[#allocation3] sm:$0x1] %v104_v55 }
 0x166   :  { %v112_v59 = vld [vmem:[#allocation3] sm:$0x1] }
 0x167   :  { %v113_v62 = vmul.f32 0.5, %v112_v59 }
 0x169   :  { %v115_v0 = vmul.f32 %v114_v60, %v113_v62 }
 0x16b   :  { %v116_v1 = vadd.f32 %v115_v0, %v111_v61 }
 0x16d   :  { %v124_v3 = vsel %vm123_vm3, %v116_v1, %v121_v2 }
 0x16e   :  { %125 = vst [vmem:[#allocation8] sm:$0x3] %v124_v3 }
 0x16f   :  { %185 = shalt.err (!%p182_p9)
}
 0x170   :  { %135 = dma.vmem_to_hbm [thread:$0]  %s133_s28, 32, %s261_s5, [#allocation7]  }
 0x171   :  { %196 = dma.done.wait [#allocation7], 32  }
 0x172   :  { %197 = vsyncadd [#allocation7], 4294967264 }
 0x173   :  { %139 = vsyncpa [#allocation6], 1 }
 0x174   :  { %140 = vsyncpa [#allocation7], 1 }

</bundles_post_ra>
